<compile_context>
chip_gen: v7x
topology: tpu7x:2x2x1
jax: 0.10.0
libtpu: 0.0.40
codegen_flags: <defaults>
</compile_context>

<pallas_src>
import jax
import jax.numpy as jnp
from jax.experimental import pallas as pl
from jax.experimental.pallas import tpu as pltpu


def _round_up(x: int, m: int) -> int:
    return ((x + m - 1) // m) * m


def _halve_to_8(t: int) -> int:
    return max(8, ((t // 2) // 8) * 8)


# ----------------------------- kernels --------------------------------------


def _lowrank_kernel(x_ref, w1t_ref, w2t_ref, b2_ref, o_ref):
    # hidden = x @ W1^T  (weights pre-transposed -> plain MXU dot, no in-kernel .T)
    h = jnp.dot(x_ref[...], w1t_ref[...], preferred_element_type=jnp.float32)
    # out = hidden @ W2^T + b2  (f32 accumulation, f32 bias add, single cast out)
    y = jnp.dot(h.astype(w2t_ref.dtype), w2t_ref[...],
                preferred_element_type=jnp.float32)
    o_ref[...] = (y + b2_ref[...]).astype(o_ref.dtype)


def _lowrank_kernel_ktiled(x_ref, w1t_ref, w2t_ref, b2_ref, o_ref, h_acc_ref):
    # K (D_in) is the innermost "arbitrary" grid axis; hidden accumulates in f32.
    k = pl.program_id(1)

    @pl.when(k == 0)
    def _():
        h_acc_ref[...] = jnp.zeros_like(h_acc_ref)

    h_acc_ref[...] += jnp.dot(x_ref[...], w1t_ref[...],
                              preferred_element_type=jnp.float32)

    @pl.when(k == pl.num_programs(1) - 1)
    def _():
        y = jnp.dot(h_acc_ref[...].astype(w2t_ref.dtype), w2t_ref[...],
                    preferred_element_type=jnp.float32)
        o_ref[...] = (y + b2_ref[...]).astype(o_ref.dtype)


# --------------------------- host-side helpers -------------------------------


def prepare_lowrank_dense_weights(w1, w2, b2, *, compute_dtype=None):
    """One-time (cacheable) weight prep: transpose + zero-pad rank/D_out to 128.

    w1: (rank, D_in)  -- torch Linear(input_dim, rank, bias=False).weight
    w2: (D_out, rank) -- torch Linear(rank, output_dim).weight
    b2: (D_out,)      -- torch Linear(rank, output_dim).bias
    Returns (w1t, w2t, b2p) with shapes (D_in, rank_p), (rank_p, D_out_p), (1, D_out_p).
    """
    rank, d_in = w1.shape
    d_out = w2.shape[0]
    cdt = compute_dtype if compute_dtype is not None else w1.dtype
    rank_p = _round_up(rank, 128)
    d_out_p = _round_up(d_out, 128)
    w1t = jnp.zeros((d_in, rank_p), cdt).at[:, :rank].set(w1.T.astype(cdt))
    w2t = jnp.zeros((rank_p, d_out_p), cdt).at[:rank, :d_out].set(w2.T.astype(cdt))
    b2p = jnp.zeros((1, d_out_p), jnp.float32).at[0, :d_out].set(
        b2.astype(jnp.float32))
    return w1t, w2t, b2p


def _vmem_config():
    """(tile budget, tm cap, vmem_limit_bytes) derived from the chip's VMEM."""
    vmem_cap = 64 * 1024 * 1024  # conservative default == v7x per-TC VMEM
    try:
        info = pltpu.get_tpu_info()
        cap = getattr(info, "vmem_capacity_bytes", None)
        if cap:
            vmem_cap = int(cap)
    except Exception:
        pass
    if vmem_cap >= 96 * 1024 * 1024:
        # v5e / v6e: 128 MiB VMEM -> big streamed tiles push toward HBM roofline.
        return 80 * 1024 * 1024, 1024, 96 * 1024 * 1024
    # v7x (64 MiB per TC) or unknown: stay conservative, headroom for scratch.
    return 24 * 1024 * 1024, 256, 44 * 1024 * 1024


def _vmem_bytes(tm, tk, d_in, rank_p, d_out_p, cdt_size, out_size):
    # Default BlockSpec pipelining double-buffers every operand (residents too),
    # so account 2x everywhere; output tile costed at the *output* dtype.
    # TODO(synk): use pipeline_mode=pl.Buffered(1) on the constant-index weight
    # specs (halves their VMEM) once verified on the target jax version.
    out_tile = 2 * tm * d_out_p * out_size
    w2_res = 2 * rank_p * d_out_p * cdt_size
    b_res = 2 * d_out_p * 4
    if tk is None:  # K untiled: x tile streamed, W1^T fully resident
        x_tile = 2 * tm * d_in * cdt_size
        w1 = 2 * d_in * rank_p * cdt_size
        h_acc = 0
    else:           # K tiled: x and W1^T blocks streamed, f32 hidden accumulator
        x_tile = 2 * tm * tk * cdt_size
        w1 = 2 * tk * rank_p * cdt_size
        h_acc = tm * rank_p * 4
    return x_tile + w1 + w2_res + b_res + out_tile + h_acc


def _select_tiles(B, d_in, rank_p, d_out_p, cdt_size, out_size, budget, tm_cap,
                  tm_user=None, tk_user=None):
    """Pick (tm, tk); tk is None for the un-tiled-K (simple) path."""
    b8 = _round_up(max(B, 1), 8)
    # >= 2 grid steps on the batch ("parallel") axis so both v7x cores get work.
    two_step = _round_up(pl.cdiv(B, 2), 8) if B > 8 else b8
    cap = max(8, min(tm_cap, b8, two_step))

    def fits(tm, tk):
        return _vmem_bytes(tm, tk, d_in, rank_p, d_out_p,
                           cdt_size, out_size) <= budget

    if tk_user is not None:
        if tk_user % 128 != 0 or d_in % tk_user != 0:
            raise ValueError("tk must be a multiple of 128 that divides D_in")
        t = tm_user if tm_user is not None else cap
        t = max(8, _round_up(min(t, b8), 8))
        while t > 8 and not fits(t, tk_user):
            t = _halve_to_8(t)
        return t, tk_user

    tm0 = tm_user if tm_user is not None else cap
    tm0 = max(8, _round_up(min(tm0, b8), 8))
    thresh = 8 if tm_user is not None else min(cap, 128)

    # Prefer the simple (un-tiled K) path if it fits at a reasonable tile size.
    t = tm0
    while t > 8 and not fits(t, None):
        t = _halve_to_8(t)
    if fits(t, None) and t >= thresh:
        return t, None

    # D_in too large: tile K (must divide D_in exactly so no OOB garbage mixes in).
    if d_in % 128 == 0:
        for tk in (2048, 1024, 512, 256, 128):
            if d_in % tk:
                continue
            t = tm0
            while t > 8 and not fits(t, tk):
                t = _halve_to_8(t)
            if fits(t, tk) and t >= thresh:
                return t, tk

    # Fallback: simple path at whatever tm fits.
    t = tm0
    while t > 8 and not fits(t, None):
        t = _halve_to_8(t)
    return max(8, t), None


# ------------------------------ entry points ---------------------------------


def lowrank_dense_prepped(x, w1t, w2t, b2p, d_out=None, *, tm=None, tk=None,
                          out_dtype=None, return_padded=False):
    """Hot path: fused low-rank dense with pre-transposed / pre-padded weights."""
    B, d_in = x.shape
    d_in_w, rank_p = w1t.shape
    rank_p2, d_out_p = w2t.shape
    assert d_in == d_in_w and rank_p == rank_p2 and b2p.shape == (1, d_out_p)
    d_out = d_out_p if d_out is None else d_out
    out_dtype = out_dtype if out_dtype is not None else x.dtype
    cdt = w1t.dtype
    # Pass x already in the compute dtype to make this a no-op (no extra HBM pass).
    xp = x if x.dtype == cdt else x.astype(cdt)

    budget, tm_cap, vmem_limit = _vmem_config()
    tm, tk = _select_tiles(B, d_in, rank_p, d_out_p,
                           jnp.dtype(cdt).itemsize, jnp.dtype(out_dtype).itemsize,
                           budget, tm_cap, tm, tk)

    # TODO(synk): add a D_out ("parallel") grid axis (block W2^T/b2/out along it,
    # keep x's index_map constant along it) for very large output dims on v7x.
    if tk is None:
        out = pl.pallas_call(
            _lowrank_kernel,
            out_shape=jax.ShapeDtypeStruct((B, d_out_p), out_dtype),
            grid_spec=pltpu.PrefetchScalarGridSpec(
                num_scalar_prefetch=0,
                grid=(pl.cdiv(B, tm),),
                in_specs=[
                    pl.BlockSpec((tm, d_in), lambda i: (i, 0)),         # x (streamed)
                    pl.BlockSpec((d_in, rank_p), lambda i: (0, 0)),     # W1^T (resident)
                    pl.BlockSpec((rank_p, d_out_p), lambda i: (0, 0)),  # W2^T (resident)
                    pl.BlockSpec((1, d_out_p), lambda i: (0, 0)),       # b2   (resident)
                ],
                out_specs=pl.BlockSpec((tm, d_out_p), lambda i: (i, 0)),
            ),
            compiler_params=pltpu.CompilerParams(
                dimension_semantics=("parallel",),
                vmem_limit_bytes=vmem_limit,
            ),
        )(xp, w1t, w2t, b2p)
    else:
        nk = d_in // tk
        out = pl.pallas_call(
            _lowrank_kernel_ktiled,
            out_shape=jax.ShapeDtypeStruct((B, d_out_p), out_dtype),
            grid_spec=pltpu.PrefetchScalarGridSpec(
                num_scalar_prefetch=0,
                grid=(pl.cdiv(B, tm), nk),
                in_specs=[
                    pl.BlockSpec((tm, tk), lambda i, k: (i, k)),           # x block
                    pl.BlockSpec((tk, rank_p), lambda i, k: (k, 0)),       # W1^T block
                    pl.BlockSpec((rank_p, d_out_p), lambda i, k: (0, 0)),  # W2^T
                    pl.BlockSpec((1, d_out_p), lambda i, k: (0, 0)),       # b2
                ],
                out_specs=pl.BlockSpec((tm, d_out_p), lambda i, k: (i, 0)),
                scratch_shapes=[pltpu.VMEM((tm, rank_p), jnp.float32)],
            ),
            compiler_params=pltpu.CompilerParams(
                dimension_semantics=("parallel", "arbitrary"),
                vmem_limit_bytes=vmem_limit,
            ),
        )(xp, w1t, w2t, b2p)

    if return_padded or d_out_p == d_out:
        return out
    return out[:, :d_out]


def lowrank_dense(x, w1, w2, b2, *, tm=None, tk=None, compute_dtype=None,
                  out_dtype=None, return_padded=False):
    """Convenience wrapper: prep weights (ideally cache this) then run the kernel."""
    cdt = compute_dtype if compute_dtype is not None else x.dtype
    w1t, w2t, b2p = prepare_lowrank_dense_weights(w1, w2, b2, compute_dtype=cdt)
    return lowrank_dense_prepped(x, w1t, w2t, b2p, w2.shape[0], tm=tm, tk=tk,
                                 out_dtype=out_dtype, return_padded=return_padded)


if __name__ == "__main__":
    key = jax.random.PRNGKey(0)
    kx, k1, k2, kb, kx2, k12, k22, kb2 = jax.random.split(key, 8)

    # ---- Case 1: f32, small shapes, simple (un-tiled K) path ----------------
    B, D_in, D_out, rank = 16, 64, 32, 16
    x = jax.random.normal(kx, (B, D_in), dtype=jnp.float32)
    w1 = jax.random.normal(k1, (rank, D_in), dtype=jnp.float32) * (1.0 / D_in ** 0.5)
    w2 = jax.random.normal(k2, (D_out, rank), dtype=jnp.float32) * (1.0 / rank ** 0.5)
    b2 = jax.random.normal(kb, (D_out,), dtype=jnp.float32) * 0.1
    ref = (x @ w1.T) @ w2.T + b2[None, :]

    out = jax.block_until_ready(lowrank_dense(x, w1, w2, b2))
    assert out.shape == (B, D_out)
    assert jnp.allclose(out, ref, atol=1e-4, rtol=1e-4), "f32 path mismatch"

    # ---- Case 2: bf16 in / bf16 compute / bf16 out, cached prepped weights ---
    w1t, w2t, b2p = prepare_lowrank_dense_weights(w1, w2, b2,
                                                  compute_dtype=jnp.bfloat16)
    out_bf16 = jax.block_until_ready(
        lowrank_dense_prepped(x.astype(jnp.bfloat16), w1t, w2t, b2p, D_out,
                              out_dtype=jnp.bfloat16))
    assert out_bf16.shape == (B, D_out)
    assert jnp.allclose(out_bf16.astype(jnp.float32), ref,
                        atol=1e-1, rtol=1e-1), "bf16 path mismatch"

    # ---- Case 3: K-tiled (large-D_in) code path, forced small here ----------
    B3, D_in3, D_out3, rank3 = 24, 256, 40, 12
    x3 = jax.random.normal(kx2, (B3, D_in3), dtype=jnp.float32)
    w13 = jax.random.normal(k12, (rank3, D_in3), dtype=jnp.float32) * (1.0 / D_in3 ** 0.5)
    w23 = jax.random.normal(k22, (D_out3, rank3), dtype=jnp.float32) * (1.0 / rank3 ** 0.5)
    b23 = jax.random.normal(kb2, (D_out3,), dtype=jnp.float32) * 0.1
    ref3 = (x3 @ w13.T) @ w23.T + b23[None, :]

    out3 = jax.block_until_ready(lowrank_dense(x3, w13, w23, b23, tk=128))
    assert out3.shape == (B3, D_out3)
    assert jnp.allclose(out3, ref3, atol=1e-3, rtol=1e-3), "K-tiled path mismatch"

    print("KERNEL_OK")
</pallas_src>

<mosaic_0001>
module attributes {stable_mosaic.version = 11 : i64} {
  func.func @_lowrank_kernel(%arg0: i32, %arg1: memref<8x64xf32, #tpu.memory_space<vmem>>, %arg2: memref<64x128xf32, #tpu.memory_space<vmem>>, %arg3: memref<128x128xf32, #tpu.memory_space<vmem>>, %arg4: memref<1x128xf32, #tpu.memory_space<vmem>>, %arg5: memref<8x128xf32, #tpu.memory_space<vmem>>) attributes {dimension_semantics = [#tpu.dimension_semantics<parallel>], iteration_bounds = array<i64: 2>, scalar_prefetch = 0 : i64, scratch_operands = 0 : i64, tpu.core_type = #tpu.core_type<tc>, window_params = [{transform_indices = @transform_0, window_bounds = array<i64: 8, 64>}, {pipeline_mode = #tpu.pipeline_mode<synchronous>, transform_indices = @transform_1, window_bounds = array<i64: 64, 128>}, {pipeline_mode = #tpu.pipeline_mode<synchronous>, transform_indices = @transform_2, window_bounds = array<i64: 128, 128>}, {pipeline_mode = #tpu.pipeline_mode<synchronous>, transform_indices = @transform_3, window_bounds = array<i64: 1, 128>}, {transform_indices = @transform_4, window_bounds = array<i64: 8, 128>}]} {
    %c0 = arith.constant 0 : index
    %c0_0 = arith.constant 0 : index
    %0 = vector.load %arg1[%c0, %c0_0] : memref<8x64xf32, #tpu.memory_space<vmem>>, vector<8x64xf32>
    %c0_1 = arith.constant 0 : index
    %c0_2 = arith.constant 0 : index
    %1 = vector.load %arg2[%c0_1, %c0_2] : memref<64x128xf32, #tpu.memory_space<vmem>>, vector<64x128xf32>
    %cst = arith.constant dense<0.000000e+00> : vector<8x128xf32>
    %2 = tpu.matmul %0, %1, %cst {dimension_numbers = #tpu.dot_dimension_numbers<[1], [0], [0], [1], [0, 0, 1, 1], [], []>} : vector<8x64xf32>, vector<64x128xf32>, vector<8x128xf32> -> vector<8x128xf32>
    %c0_3 = arith.constant 0 : index
    %c0_4 = arith.constant 0 : index
    %3 = vector.load %arg3[%c0_3, %c0_4] : memref<128x128xf32, #tpu.memory_space<vmem>>, vector<128x128xf32>
    %cst_5 = arith.constant dense<0.000000e+00> : vector<8x128xf32>
    %4 = tpu.matmul %2, %3, %cst_5 {dimension_numbers = #tpu.dot_dimension_numbers<[1], [0], [0], [1], [0, 0, 1, 1], [], []>} : vector<8x128xf32>, vector<128x128xf32>, vector<8x128xf32> -> vector<8x128xf32>
    %c0_6 = arith.constant 0 : index
    %c0_7 = arith.constant 0 : index
    %5 = vector.load %arg4[%c0_6, %c0_7] : memref<1x128xf32, #tpu.memory_space<vmem>>, vector<1x128xf32>
    %6 = vector.broadcast %5 : vector<1x128xf32> to vector<8x128xf32>
    %7 = arith.addf %4, %6 : vector<8x128xf32>
    %c0_8 = arith.constant 0 : index
    %c0_9 = arith.constant 0 : index
    %8 = vector.load %arg5[%c0_8, %c0_9] : memref<8x128xf32, #tpu.memory_space<vmem>>, vector<8x128xf32>
    tpu.vector_store %arg5[%c0_8, %c0_9], %7 {strides = array<i32>} : memref<8x128xf32, #tpu.memory_space<vmem>>, vector<8x128xf32>,
    return
  }
  func.func @transform_0(%arg0: i32) -> (i32, i32) {
    %c0_i32 = arith.constant 0 : i32
    %c0_i32_0 = arith.constant 0 : i32
    return %arg0, %c0_i32 : i32, i32
  }
  func.func @transform_1(%arg0: i32) -> (i32, i32) {
    %c0_i32 = arith.constant 0 : i32
    %c0_i32_0 = arith.constant 0 : i32
    %c0_i32_1 = arith.constant 0 : i32
    return %c0_i32, %c0_i32_0 : i32, i32
  }
  func.func @transform_2(%arg0: i32) -> (i32, i32) {
    %c0_i32 = arith.constant 0 : i32
    %c0_i32_0 = arith.constant 0 : i32
    %c0_i32_1 = arith.constant 0 : i32
    return %c0_i32, %c0_i32_0 : i32, i32
  }
  func.func @transform_3(%arg0: i32) -> (i32, i32) {
    %c0_i32 = arith.constant 0 : i32
    %c0_i32_0 = arith.constant 0 : i32
    %c0_i32_1 = arith.constant 0 : i32
    return %c0_i32, %c0_i32_0 : i32, i32
  }
  func.func @transform_4(%arg0: i32) -> (i32, i32) {
    %c0_i32 = arith.constant 0 : i32
    %c0_i32_0 = arith.constant 0 : i32
    return %arg0, %c0_i32 : i32, i32
  }
}

</mosaic_0001>

<bundles_post_ra>
// kernel: tpu_custom_call.1
= control target key start
LH: loop header
LB: loop body
LE: loop exit
PB: predicated region body
PF: predicated region fallthrough
CT: control target
= control target key end

     0   :  { %9 = vsyncpa [#allocation3], 0  ;;  %s1171_s0 = inlined_call_operand.hbm [shape: f32[16,64], index: 0, kind: input, shape index: {}]   ;;  %s1172_s1 = inlined_call_operand.hbm [shape: f32[64,128], index: 1, kind: input, shape index: {}]   ;;  %s1173_s2 = inlined_call_operand.hbm [shape: f32[128,128], index: 2, kind: input, shape index: {}]   ;;  %s1174_s3 = inlined_call_operand.vmem [shape: f32[1,128], index: 3, kind: input, shape index: {}]   ;;  %s1175_s4 = inlined_call_operand.hbm [shape: f32[16,128], index: 4, kind: output, shape index: {}]  }
   0x1   :  { %11 = vsyncpa [#allocation3 + $0x1], 0 }
   0x2   :  { %12 = vsyncpa [#allocation6], 0 }
   0x3   :  { %13 = vsyncpa [#allocation4], 0 }
   0x4   :  { %15 = vsyncpa [#allocation4 + $0x1], 0  ;;  %s920_s15 = smov 0   ;;  %s922_s16 = smov 0  }
   0x5   :  { %s924_s17 = smov 0   ;;  %s926_s18 = smov 0  }
   0x6 LB: > { %s941_s19 = sadd.s32 4294967295, %s884_s18   ;;  %s522_s20 = sadd.s32 4294967294, %s884_s18   ;;  %s884_s18 = sphi %s926_s18, %s1195_s18   ;;  %s880_s17 = sphi %s924_s17, %s1194_s17   ;;  %s876_s16 = sphi %s922_s16, %s1193_s16   ;;  %s872_s15 = sphi %s920_s15, %s1192_s15  }
   0x7   : > { %p41_p0 = scmp.ne.s32.totalorder %s876_s16, %s872_s15  ;;  %p1176_p1 = scmp.eq.s32.totalorder %s941_s19, 0 }
   0x8   : > { %p134_p3 = scmp.eq.s32.totalorder %s522_s20, 1  ;;  %p523_p5 = scmp.ge.s32.totalorder %s884_s18, 1 }
   0x9   : > { %p950_p4 = por %p1176_p1, %p41_p0  ;;  %p141_p7 = scmp.lt.s32.totalorder %s884_s18, 3 }
   0xa   : > { %p955_p6 = por %p134_p3, %p41_p0  ;;  %s886_s24 = smov [#allocation5]  }
   0xb   : > { %s1179_s21 = scalar_select %p950_p4, 1, 0 }
   0xc   : > { %s1180_s22 = scalar_select %p955_p6, 1, 0 }
   0xd   : > { %p960_p8 = pnand %p523_p5, %p141_p7  ;;  %s153_s25 = sshll.u32 %s886_s24, 4  ;;  %s964_s25 = int_to_ptr.vmem [resolvable:$true] %s153_s25 }
   0xe   : > { %s887_s27 = smov [#allocation7]   ;;  %s728_s5 = scalar_lea.hbm %s1172_s1, 1024 }
   0xf   : > { %p668_p9 = pneg %p960_p8  ;;  %s166_s28 = sshll.u32 %s887_s27, 4  ;;  %s975_s28 = int_to_ptr.vmem [resolvable:$true] %s166_s28 }
  0x10   : > { %p729_p12 = scmp.ne.s32.totalorder %s1172_s1, %s728_s5  ;;  %p735_p5 = scmp.lt.u32.totalorder %s728_s5, %s1172_s1 }
  0x11   : > { %p971_p11 = pnand %p668_p9, %p1176_p1 }
  0x13   : > { %p730_p13 = pneg %p971_p11 }
  0x15   : > { %p731_p0 = pnand %p730_p13, %p729_p12 }
  0x17   : > { %p732_p3 = pneg %p731_p0 }
  0x19   : > { %p737_p7 = pnand %p735_p5, %p732_p3 }
  0x1b   : > { %740 = shalt.err (!%p737_p7)
}
  0x1c   : > { %s741_s10 = scalar_lea.vmem %s964_s25, 1024  ;;  %p749_p2 = scmp.lt.s32.totalorder %s964_s25, %s964_s25 }
  0x1d   : > { %p742_p9 = scmp.ne.s32.totalorder %s964_s25, %s741_s10  ;;  %p750_p12 = scmp.lt.s32.totalorder %s741_s10, %s741_s10 }
  0x1f   : > { %p744_p10 = pnand %p742_p9, %p730_p13  ;;  %p751_p0 = por %p750_p12, %p749_p2 }
  0x21   : > { %p745_p1 = pneg %p744_p10 }
  0x23   : > { %p752_p6 = pnand %p751_p0, %p745_p1 }
  0x25   : > { %755 = shalt.err (!%p752_p6)
}
  0x26   : > { %s888_s11 = smov 128   ;;  %s889_s12 = smov 8  }
  0x27   : > { %671 = dma.hbm_to_vmem [thread:$0]  (!%p971_p11), %s1172_s1, 1024, %s964_s25, [#allocation6], %s888_s11, %s888_s11, %s889_s12  }
  0x28   : > { %s756_s27 = scalar_lea.hbm %s1173_s2, 2048 }
  0x29   : > { %p757_p2 = scmp.ne.s32.totalorder %s1173_s2, %s756_s27  ;;  %p763_p10 = scmp.lt.u32.totalorder %s756_s27, %s1173_s2 }
  0x2b   : > { %p759_p1 = pnand %p757_p2, %p730_p13 }
  0x2d   : > { %p760_p6 = pneg %p759_p1 }
  0x2f   : > { %p765_p3 = pnand %p763_p10, %p760_p6 }
  0x31   : > { %768 = shalt.err (!%p765_p3)
}
  0x32   : > { %s769_s25 = scalar_lea.vmem %s975_s28, 2048  ;;  %p777_p12 = scmp.lt.s32.totalorder %s975_s28, %s975_s28 }
  0x33   : > { %p770_p5 = scmp.ne.s32.totalorder %s975_s28, %s769_s25  ;;  %p778_p0 = scmp.lt.s32.totalorder %s769_s25, %s769_s25 }
  0x35   : > { %p772_p7 = pnand %p770_p5, %p730_p13  ;;  %p779_p2 = por %p778_p0, %p777_p12 }
  0x37   : > { %p773_p9 = pneg %p772_p7 }
  0x39   : > { %p780_p1 = pnand %p779_p2, %p773_p9 }
  0x3b   : > { %783 = shalt.err (!%p780_p1)
}
  0x3c   : > { %674 = dma.hbm_to_vmem [thread:$0]  (!%p971_p11), %s1173_s2, 2048, %s975_s28, [#allocation6], %s888_s11, %s888_s11, %s889_s12  }
  0x3d   : > { %s1030_s9 = sadd.s32 1, %s884_s18   ;;  %s28_s26 = sadd.s32 1, %s880_s17 }
  0x3e   : > { %s25_s10 = ssub.s32 %s884_s18, %s1030_s9  ;;  %p35_p13 = scmp.ne.s32.totalorder %s880_s17, %s876_s16 }
  0x3f   : > { %p26_p6 = scmp.eq.s32.totalorder %s25_s10, 0  ;;  %p36_p10 = scmp.eq.s32.totalorder %s884_s18, 0 }
  0x40   : > { %p1183_p3 = scmp.eq.s32.totalorder %s941_s19, 1  ;;  %p685_p7 = scmp.lt.s32.totalorder %s884_s18, 2 }
  0x41   : > { %s1046_s14 = scalar_select %p26_p6, %s880_s17, %s28_s26  }
  0x42   : > { %p1040_p5 = por %p1183_p3, %p35_p13  ;;  %p37_p9 = por %p36_p10, %p35_p13 }
  0x43   : > { %s183_s20 = sand.u32 1, %s880_s17   ;;  %s528_s28 = sshll.u32 %s884_s18, 7 }
  0x44   : > { %s1184_s13 = scalar_select %p1040_p5, 1, 0 }
  0x45   : > { %s527_s24 = sshll.u32 %s183_s20, 3  ;;  %s1053_s27 = scalar_lea.hbm %s1171_s0, %s528_s28 }
  0x46   : > { %s187_s29 = scalar_lea.vmem [#allocation2], %s527_s24  ;;  %p1057_p11 = pnand %p685_p7, %p37_p9 }
  0x47   : > { %s194_s30 = sshll.u32 %s187_s29, 4  ;;  %s184_s6 = scalar_lea.sflag [#allocation3], %s183_s20  ;;  %s1055_s30 = int_to_ptr.vmem [resolvable:$true] %s194_s30 }
  0x48   : > { %s784_s25 = scalar_lea.hbm %s1053_s27, 128  ;;  %p786_p0 = pneg %p1057_p11 }
  0x49   : > { %p785_p12 = scmp.ne.s32.totalorder %s1053_s27, %s784_s25  ;;  %s789_s26 = scalar_lea.hbm %s1171_s0, 256 }
  0x4a   : > { %p790_p13 = scmp.lt.u32.totalorder %s1053_s27, %s1171_s0  ;;  %p791_p6 = scmp.lt.u32.totalorder %s789_s26, %s784_s25 }
  0x4b   : > { %p787_p2 = pnand %p786_p0, %p785_p12  ;;  %p793_p3 = scmp.lt.u32.totalorder %s784_s25, %s1053_s27 }
  0x4c   : > { %p792_p10 = por %p791_p6, %p790_p13 }
  0x4d   : > { %p788_p1 = pneg %p787_p2 }
  0x4e   : > { %p794_p7 = por %p793_p3, %p792_p10 }
  0x50   : > { %p795_p9 = pnand %p794_p7, %p788_p1 }
  0x52   : > { %798 = shalt.err (!%p795_p9)
}
  0x53   : > { %s799_s20 = scalar_lea.vmem %s1055_s30, 128  ;;  %s890_s28 = smov [#allocation2]  }
  0x54   : > { %p800_p12 = scmp.ne.s32.totalorder %s1055_s30, %s799_s20  ;;  %s804_s11 = sshll.u32 %s890_s28, 4  ;;  %s805_s11 = int_to_ptr.vmem [resolvable:$false] %s804_s11 }
  0x55   : > { %s806_s12 = scalar_lea.vmem %s805_s11, 256  ;;  %p807_p4 = scmp.lt.s32.totalorder %s1055_s30, %s805_s11 }
  0x56   : > { %p802_p2 = pnand %p800_p12, %p786_p0  ;;  %p808_p13 = scmp.lt.s32.totalorder %s806_s12, %s799_s20 }
  0x58   : > { %p803_p5 = pneg %p802_p2  ;;  %p809_p6 = por %p808_p13, %p807_p4 }
  0x5a   : > { %p810_p10 = pnand %p809_p6, %p803_p5 }
  0x5c   : > { %813 = shalt.err (!%p810_p10)
}
  0x5d   : > { %678 = dma.hbm_to_vmem [thread:$0]  (!%p1057_p11), %s1053_s27, 128, %s1055_s30, %s184_s6  }
  0x5e   : > { %203 = sbr.rel (%p960_p8) target bundleno = 563 (0x233), region = 36  ;;  %s1089_s29 = sand.u32 (!%p960_p8), 1, %s876_s16  }
  0x5f   : > { %s530_s25 = sshll.u32 (!%p960_p8), %s1089_s29, 3  ;;  %s206_s7 = scalar_lea.sflag (!%p960_p8), [#allocation3], %s1089_s29 }
  0x60   : > { %s1095_s8 = scalar_lea.vmem (!%p960_p8), [#allocation2], %s530_s25  ;;  %p1186_p4 = scmp.ne.s32.totalorder (!%p960_p8), %s1179_s21, 0 }
  0x65   : > { %859 = dma.done.wait (%p1186_p4), %s206_s7, 128  }
  0x66   : > { %861 = vsyncadd (%p1186_p4), %s206_s7, 4294967168  ;;  %p1187_p5 = scmp.eq.s32.totalorder %s941_s19, 0 }
  0x68   : > { %863 = dma.done.wait (%p1187_p5), [#allocation6], 3072   ;;  %p1188_p8 = pmov %p1187_p5 }
  0x69   : > { %v891_v0 = vmov 0.0|0.0   ;;  %vm892_vm0 = vmmov 0   ;;  %v893_v1 = vmov 0.0   ;;  %v243_v2 = vld [vmem:[#allocation5] sm:$0xff]  ;;  %v244_v3 = vld [vmem:[#allocation5 + $0x8] sm:$0xff]  ;;  %v245_v4 = vld [vmem:[#allocation5 + $0x10] sm:$0xff] }
  0x6a   : > { %865 = vsyncadd (%p1188_p8), [#allocation6], 4294964224  ;;  %620 = vmatprep.subr.bf16.mxu0 %v891_v0  ;;  %582 = vmatprep.mubr.msk.f32.mxu0 %vm892_vm0, %v893_v1  ;;  %v621_v5 = vpack.c.bf16 %v244_v3, %v243_v2  ;;  %v246_v6 = vld [vmem:[#allocation5 + $0x18] sm:$0xff]  ;;  %v325_v8 = vld [vmem:[#allocation7] sm:$0xff]  ;;  %vm251_vm1 = vcmask 523264   ;;  %s537_s27 = sshll.u32 %s941_s19, 7 }
  0x6b   : > { %632 = vmatprep.subr.bf16.mxu1 %v891_v0  ;;  %617 = vmatprep.mubr.msk.f32.mxu1 %vm892_vm0, %v893_v1  ;;  %v624_v7 = vpack.c.bf16 %v246_v6, %v245_v4  ;;  %v326_v9 = vld [vmem:[#allocation7 + $0x8] sm:$0xff]  ;;  %v327_v10 = vld [vmem:[#allocation7 + $0x10] sm:$0xff]  ;;  %v247_v11 = vld [vmem:[#allocation5 + $0x20] sm:$0xff]  ;;  %s241_s30 = scalar_lea.vmem [#allocation8], %s530_s25  ;;  %s1127_s10 = scalar_lea.hbm %s1175_s4, %s537_s27 }
  0x6c   : > { %622 = vmatpush3.bf16.msra.mxu0 %v621_v5  ;;  %v248_v12 = vld [vmem:[#allocation5 + $0x28] sm:$0xff]  ;;  %v633_v13 = vpack.c.bf16 %v326_v9, %v325_v8  ;;  %v328_v14 = vld [vmem:[#allocation7 + $0x18] sm:$0xff]  ;;  %v329_v17 = vld [vmem:[#allocation7 + $0x20] sm:$0xff]  ;;  %s433_s5 = sshll.u32 %s241_s30, 4  ;;  %s420_s24 = scalar_lea.sflag [#allocation4], %s1089_s29  ;;  %s1129_s5 = int_to_ptr.vmem [resolvable:$true] %s433_s5 }
  0x6d   : > { %623 = vmatprep.subr.bf16.mxu0 %v891_v0  ;;  %v636_v15 = vpack.c.bf16 %v328_v14, %v327_v10  ;;  %v627_v16 = vpack.c.bf16 %v248_v12, %v247_v11  ;;  %v330_v18 = vld [vmem:[#allocation7 + $0x28] sm:$0xff]  ;;  %v249_v19 = vld [vmem:[#allocation5 + $0x30] sm:$0xff]  ;;  %v250_v20 = vld [vmem:[#allocation5 + $0x38] sm:$0xff]  ;;  %s814_s20 = scalar_lea.vmem %s1129_s5, 128  ;;  %p1189_p0 = scmp.ne.s32.totalorder %s1184_s13, 0 }
  0x6e   : > { %634 = vmatpush3.bf16.msra.mxu1 %v633_v13  ;;  %v639_v21 = vpack.c.bf16 %v330_v18, %v329_v17  ;;  %v630_v22 = vpack.c.bf16 %v250_v20, %v249_v19  ;;  %v331_v23 = vld [vmem:[#allocation7 + $0x30] sm:$0xff]  ;;  %v332_v24 = vld [vmem:[#allocation7 + $0x38] sm:$0xff]  ;;  %v333_v27 = vld [vmem:[#allocation7 + $0x40] sm:$0xff]  ;;  %p815_p11 = scmp.ne.s32.totalorder %s1129_s5, %s814_s20  ;;  %s894_s19 = smov [#allocation8]  }
  0x6f   : > { %635 = vmatprep.subr.bf16.mxu1 %v891_v0  ;;  %v642_v25 = vpack.c.bf16 %v332_v24, %v331_v23  ;;  %v242_v26 = vld [vmem:[%s1095_s8] sm:$0xff]  ;;  %v334_v28 = vld [vmem:[#allocation7 + $0x48] sm:$0xff]  ;;  %v337_v33 = vld [vmem:[#allocation7 + $0x60] sm:$0xff]  ;;  %s818_s28 = sshll.u32 %s894_s19, 4  ;;  %s819_s28 = int_to_ptr.vmem [resolvable:$false] %s818_s28 }
  0x70   : > { %625 = vmatpush3.bf16.msra.mxu0 %v624_v7  ;;  %v645_v29 = vpack.c.bf16 %v334_v28, %v333_v27  ;;  %v335_v30 = vld [vmem:[#allocation7 + $0x50] sm:$0xff]  ;;  %v336_v31 = vld [vmem:[#allocation7 + $0x58] sm:$0xff]  ;;  %v338_v34 = vld [vmem:[#allocation7 + $0x68] sm:$0xff]  ;;  %p816_p1 = pnand %p815_p11, %p1189_p0  ;;  %s820_s11 = scalar_lea.vmem %s819_s28, 256 }
  0x71   : > { %626 = vmatprep.subr.bf16.mxu0 %v891_v0  ;;  %v648_v32 = vpack.c.bf16 %v336_v31, %v335_v30  ;;  %v651_v35 = vpack.c.bf16 %v338_v34, %v337_v33  ;;  %v339_v36 = vld [vmem:[#allocation7 + $0x70] sm:$0xff]  ;;  %v340_v37 = vld [vmem:[#allocation7 + $0x78] sm:$0xff]  ;;  %p821_p7 = scmp.lt.s32.totalorder %s1129_s5, %s819_s28  ;;  %p822_p9 = scmp.lt.s32.totalorder %s820_s11, %s814_s20 }
  0x72   : > { %637 = vmatpush3.bf16.msra.mxu1 %v636_v15  ;;  %v654_v38 = vpack.c.bf16 %v340_v37, %v339_v36  ;;  %v535_v41 = vld [vmem:[%s1174_s3] ss:$0 sm:$0xff]  ;;  %p817_p3 = pneg %p816_p1 }
  0x73   : > { %638 = vmatprep.subr.bf16.mxu1 %v891_v0  ;;  %p823_p12 = por %p822_p9, %p821_p7 }
  0x74   : > { %628 = vmatpush3.bf16.msra.mxu0 %v627_v16 }
  0x75   : > { %629 = vmatprep.subr.bf16.mxu0 %v891_v0  ;;  %p824_p2 = pnand %p823_p12, %p817_p3 }
  0x76   : > { %640 = vmatpush3.bf16.msra.mxu1 %v639_v21 }
  0x77   : > { %641 = vmatprep.subr.bf16.mxu1 %v891_v0 }
  0x78   : > { %631 = vmatpush3.bf16.msra.mxu0 %v630_v22 }
  0x7a   : > { %643 = vmatpush3.bf16.msra.mxu1 %v642_v25 }
  0x7b   : > { %583 = vmatmul.mubr.msk.f32.vlgmr.msra.gmra.mrb[0].mxu0 %vm251_vm1, %v242_v26  ;;  %644 = vmatprep.subr.bf16.mxu1 %v891_v0 }
  0x7e   : > { %646 = vmatpush3.bf16.msra.mxu1 %v645_v29 }
  0x7f   : > { %647 = vmatprep.subr.bf16.mxu1 %v891_v0 }
  0x82   : > { %649 = vmatpush3.bf16.msra.mxu1 %v648_v32 }
  0x83   : > { %650 = vmatprep.subr.bf16.mxu1 %v891_v0 }
  0x86   : > { %652 = vmatpush3.bf16.msra.mxu1 %v651_v35 }
  0x87   : > { %653 = vmatprep.subr.bf16.mxu1 %v891_v0 }
  0x8a   : > { %655 = vmatpush3.bf16.msra.mxu1 %v654_v38 }
 0x14e   : > { %v321_v39 = vpop.f32.mrb[0].mxu0 }
 0x14f   : > { %v584_v40 = vpop.f32.mrb[1].mxu0  ;;  %618 = vmatmul.mubr.f32.vlgmr.msra.gmra.mrb[0].mxu1 %v321_v39 }
 0x222   : > { %v414_v42 = vpop.f32.mrb[0].mxu1 }
 0x223   : > { %v415_v43 = vadd.f32 %v535_v41, %v414_v42  ;;  %v619_v44 = vpop.f32.mrb[1].mxu1 }
 0x225   : > { %418 = vst [vmem:[%s241_s30] sm:$0xff] %v415_v43 }
 0x226   : > { %827 = shalt.err (!%p824_p2)
}
 0x227   : > { %s828_s12 = scalar_lea.hbm %s1127_s10, 128  ;;  %s832_s7 = scalar_lea.hbm %s1175_s4, 256 }
 0x228   : > { %p829_p13 = scmp.ne.s32.totalorder %s1127_s10, %s828_s12  ;;  %p833_p4 = scmp.lt.u32.totalorder %s1127_s10, %s1175_s4 }
 0x229   : > { %p834_p5 = scmp.lt.u32.totalorder %s832_s7, %s828_s12  ;;  %p836_p11 = scmp.lt.u32.totalorder %s828_s12, %s1127_s10 }
 0x22a   : > { %p830_p6 = pnand %p829_p13, %p1189_p0 }
 0x22b   : > { %p835_p8 = por %p834_p5, %p833_p4 }
 0x22c   : > { %p831_p10 = pneg %p830_p6 }
 0x22d   : > { %p837_p1 = por %p836_p11, %p835_p8 }
 0x22f   : > { %p838_p3 = pnand %p837_p1, %p831_p10 }
 0x231   : > { %841 = shalt.err (!%p838_p3)
}
 0x232   : > { %666 = dma.vmem_to_hbm [thread:$0]  (%p1189_p0), %s1129_s5, 128, %s1127_s10, %s420_s24  }
 0x233 PF: > { %s445_s23 = sand.u32 1, %s872_s15   ;;  %p1190_p7 = scmp.ne.s32.totalorder %s1180_s22, 0 }
 0x234   : > { %p1191_p9 = scmp.ge.s32.totalorder %s884_s18, 2  ;;  %s446_s27 = scalar_lea.sflag [#allocation4], %s445_s23 }
 0x236   : > { %p680_p12 = pnand %p1191_p9, %p1190_p7 }
 0x238   : > { %867 = dma.done.wait (!%p680_p12), %s446_s27, 128  }
 0x239   : > { %869 = vsyncadd (!%p680_p12), %s446_s27, 4294967168  ;;  %p18_p2 = scmp.ge.s32.totalorder %s1030_s9, 4   ;;  %s1192_s15 = smov %s876_s16 }
 0x23a   : > { %s1193_s16 = smov %s880_s17  ;;  %s1194_s17 = smov %s1046_s14 }
 0x23b   : > { %s1195_s18 = smov %s1030_s9  ;;  %20 = sbr.rel (!%p18_p2) target bundleno = 6 (0x6), region = 89 }
 0x242   :  { %451 = vsyncpa [#allocation3], 1 }
 0x243   :  { %453 = vsyncpa [#allocation3 + $0x1], 1 }
 0x244   :  { %454 = vsyncpa [#allocation6], 1 }
 0x245   :  { %455 = vsyncpa [#allocation4], 1 }
 0x246   :  { %457 = vsyncpa [#allocation4 + $0x1], 1 }

</bundles_post_ra>
